<compile_context>
chip_gen: v5e
topology: v5e:2x2
jax: 0.10.0
libtpu: 0.0.40
codegen_flags: <defaults>
</compile_context>

<pallas_src>
import functools

import jax
import jax.numpy as jnp
from jax.experimental import pallas as pl
from jax.experimental.pallas import tpu as pltpu


def _round_up(x, m):
    return ((x + m - 1) // m) * m


def _fused_mlp_kernel(*refs, num_layers):
    """Fused MLP on one (tile_B, F_in) activation tile.

    refs = (x_ref, w0, b0, w1, b1, ..., w_{L-1}, b_{L-1}, o_ref).
    Matmuls hit the MXU with f32 accumulation (operands cast to the weight
    dtype, bf16 by default); bias add + ReLU run on the VPU in f32;
    intermediates stay in vregs / VMEM and never touch HBM.
    """
    x_ref = refs[0]
    o_ref = refs[-1]
    wb = refs[1:-1]

    x = x_ref[...]
    for i in range(num_layers):
        w = wb[2 * i][...]
        b = wb[2 * i + 1][...]          # (1, F_out) f32 -> broadcasts over rows
        y = jnp.dot(x.astype(w.dtype), w, preferred_element_type=jnp.float32)
        y = y + b.astype(jnp.float32)
        if i < num_layers - 1:
            y = jnp.maximum(y, 0.0)     # ReLU on hidden layers only
        x = y
    o_ref[...] = x.astype(o_ref.dtype)


def _vmem_limit_bytes():
    """Chip-aware scoped-VMEM request with ~16 MiB headroom.

    v5e/v6e (128 MiB physical) -> ~112 MiB; v7x (64 MiB per core) -> ~48 MiB.
    If the hardware query is unavailable, fall back to 64 MiB (safe everywhere).
    """
    try:
        cap = int(pltpu.get_tpu_info().vmem_capacity_bytes)
    except Exception:
        return 64 << 20
    return int(max(32 << 20, min(cap - (16 << 20), 112 << 20)))


def tabular_decoder_forward(x, decoder_params, fc_params, *, tile_b=1024,
                            compute_dtype=jnp.bfloat16, min_pallas_batch=64):
    """Inference forward pass (dropout is identity). One fused pallas_call.

    compute_dtype: dtype of the MXU *operands* (weights cast in the wrapper,
    activations cast in-kernel). Accumulation, bias add and ReLU are always
    f32; the output keeps the input dtype. Pass jnp.float32 (or None) for a
    bit-exact-vs-f32-reference path.
    """
    if x.ndim == 3:
        x = x.reshape(x.shape[0], -1)  # flatten(start_dim=1)

    B, F_in = x.shape
    out_dim = fc_params[0].shape[1]
    out_dtype = x.dtype

    # Tiny batches: the kernel would be pure fixed overhead; XLA's fused GEMM
    # path is as fast with zero maintenance cost.
    if B < min_pallas_batch:
        h = x
        for w, b in decoder_params:
            h = jnp.maximum(h @ w + b, 0.0)
        w_fc, b_fc = fc_params
        return h @ w_fc + b_fc

    # Lane-dense output: zero-pad fc columns up to a multiple of 128 so the
    # epilogue uses unmasked vector stores; slice the pad off outside.
    w_fc, b_fc = fc_params
    out_pad = _round_up(max(out_dim, 1), 128)
    if out_pad != out_dim:
        w_fc = jnp.pad(w_fc, ((0, 0), (0, out_pad - out_dim)))
        b_fc = jnp.pad(b_fc, (0, out_pad - out_dim))
    layers = list(decoder_params) + [(w_fc, b_fc)]
    num_layers = len(layers)

    # bf16 (default) MXU operands: weights cast here; the activation operand is
    # cast inside the kernel, so the f32 input is never re-materialised in HBM.
    # Biases stay f32.
    if compute_dtype is not None:
        layers = [(w.astype(compute_dtype), b) for (w, b) in layers]

    in_itemsize = x.dtype.itemsize
    out_itemsize = jnp.dtype(out_dtype).itemsize
    sub = max(8, 32 // in_itemsize)          # sublane multiple for the batch dim
    vmem_limit = _vmem_limit_bytes()
    weight_bytes = sum(w.size * w.dtype.itemsize + b.size * b.dtype.itemsize
                       for w, b in layers)

    # Batch tile: big enough to amortize ~0.35us/grid-step, but at least 2 grid
    # steps (v7x megacore) when the batch allows; rounded to the sublane
    # multiple and clamped so double-buffered in/out tiles + weights fit VMEM.
    if B <= sub:
        tb = B                               # single full-extent block
    else:
        tb = min(_round_up(tile_b, sub), _round_up(pl.cdiv(B, 2), sub))
        per_row = 2 * (F_in * in_itemsize + out_pad * out_itemsize)
        budget = int(0.75 * vmem_limit) - 2 * weight_bytes
        tb_cap = max(sub, (max(budget, per_row) // per_row) // sub * sub)
        tb = max(sub, min(tb, tb_cap))
    grid = (pl.cdiv(B, tb),)                 # ragged last block: masked store

    flops = 2 * B * sum(w.shape[0] * w.shape[1] for w, _ in layers)
    bytes_accessed = (x.size * in_itemsize + weight_bytes
                      + B * out_pad * out_itemsize)
    kernel = functools.partial(_fused_mlp_kernel, num_layers=num_layers)

    def build_and_run(single_buffer_weights):
        in_specs = [pl.BlockSpec((tb, F_in), lambda i: (i, 0))]
        operands = [x]
        for w, b in layers:
            fi, fo = w.shape
            if single_buffer_weights and hasattr(pl, "Buffered"):
                # Constant index map -> never re-fetched; one buffer is enough
                # (halves the resident-weight VMEM footprint, matters on v7x).
                w_spec = pl.BlockSpec((fi, fo), lambda i: (0, 0),
                                      pipeline_mode=pl.Buffered(1))
                b_spec = pl.BlockSpec((1, fo), lambda i: (0, 0),
                                      pipeline_mode=pl.Buffered(1))
            else:
                w_spec = pl.BlockSpec((fi, fo), lambda i: (0, 0))
                b_spec = pl.BlockSpec((1, fo), lambda i: (0, 0))
            in_specs += [w_spec, b_spec]
            operands += [w, b.reshape(1, fo)]

        return pl.pallas_call(
            kernel,
            out_shape=jax.ShapeDtypeStruct((B, out_pad), out_dtype),
            grid=grid,
            in_specs=in_specs,
            out_specs=pl.BlockSpec((tb, out_pad), lambda i: (i, 0)),
            compiler_params=pltpu.CompilerParams(
                dimension_semantics=("parallel",),   # shard batch grid over TCs
                vmem_limit_bytes=vmem_limit,
            ),
            cost_estimate=pl.CostEstimate(
                flops=int(flops), transcendentals=0,
                bytes_accessed=int(bytes_accessed)),
        )(*operands)

    try:
        out = build_and_run(single_buffer_weights=True)
    except Exception:
        # Older jax without BlockSpec(pipeline_mode=...)/Buffered(1): fall back
        # to default double-buffered specs.
        out = build_and_run(single_buffer_weights=False)

    return out if out_pad == out_dim else out[:, :out_dim]


def init_tabular_decoder_params(key, input_dim, dim, out_dim, depth,
                                dtype=jnp.float32):
    """Deterministic parameter init matching the module's layer shapes."""
    dims = [input_dim] + [dim // (2 ** (i + 1)) for i in range(depth)]
    params = []
    for i in range(depth):
        key, kw, kb = jax.random.split(key, 3)
        fan_in = dims[i]
        w = jax.random.normal(kw, (dims[i], dims[i + 1]), dtype) * (1.0 / jnp.sqrt(fan_in))
        b = jax.random.normal(kb, (dims[i + 1],), dtype) * 0.01
        params.append((w, b))
    key, kw, kb = jax.random.split(key, 3)
    fan_in = dims[-1]
    w_fc = jax.random.normal(kw, (dims[-1], out_dim), dtype) * (1.0 / jnp.sqrt(fan_in))
    b_fc = jax.random.normal(kb, (out_dim,), dtype) * 0.01
    return params, (w_fc, b_fc)


def _reference_forward(x, decoder_params, fc_params):
    """Pure-JAX reference for correctness checking."""
    if x.ndim == 3:
        x = x.reshape(x.shape[0], -1)
    for w, b in decoder_params:
        x = jnp.maximum(x @ w + b, 0.0)
    w_fc, b_fc = fc_params
    return x @ w_fc + b_fc


if __name__ == "__main__":
    # Small shapes consistent with the module:
    #   x: (batch=2, seq=8, feat=32)  ->  flattened input_dim = 256
    #   dim = 128, depth = 2, out_dim = 16  ->  layer dims: 256 -> 64 -> 32 -> 16
    batch, seq, feat = 2, 8, 32
    input_dim = seq * feat
    dim, depth, out_dim = 128, 2, 16

    key = jax.random.PRNGKey(0)
    key, kx = jax.random.split(key)
    x = jax.random.normal(kx, (batch, seq, feat), jnp.float32)

    decoder_params, fc_params = init_tabular_decoder_params(
        key, input_dim, dim, out_dim, depth)
    ref = _reference_forward(x, decoder_params, fc_params)

    # 1) Tiny batch forced through the fused Pallas kernel, f32 operands.
    out = jax.block_until_ready(
        tabular_decoder_forward(x, decoder_params, fc_params,
                                compute_dtype=jnp.float32, min_pallas_batch=0))
    assert out.shape == (batch, out_dim), out.shape
    assert jnp.allclose(out, ref, atol=1e-4, rtol=1e-4), "mismatch vs reference (B=2)"

    # 2) Larger ragged batch (B=300, not a tile multiple): multi-step parallel
    #    grid with a masked last block, f32 operands -> tight check.
    key, kx2 = jax.random.split(key)
    xb = jax.random.normal(kx2, (300, input_dim), jnp.float32)
    ref_b = _reference_forward(xb, decoder_params, fc_params)
    out_b = jax.block_until_ready(
        tabular_decoder_forward(xb, decoder_params, fc_params,
                                tile_b=128, compute_dtype=jnp.float32))
    assert out_b.shape == (300, out_dim), out_b.shape
    assert jnp.allclose(out_b, ref_b, atol=1e-3, rtol=1e-3), "mismatch vs reference (B=300)"

    # 3) Default path: bf16 MXU operands (f32 accumulation), auto tile size,
    #    >=2 grid steps for megacore. Loose tolerance vs f32 reference.
    out_bf16 = jax.block_until_ready(
        tabular_decoder_forward(xb, decoder_params, fc_params))
    assert out_bf16.shape == (300, out_dim), out_bf16.shape
    assert bool(jnp.all(jnp.isfinite(out_bf16)))
    assert jnp.allclose(out_bf16.astype(jnp.float32), ref_b, atol=0.3, rtol=0.1), \
        "bf16 path diverged from reference"

    # 4) Tiny-batch default: falls back to plain XLA GEMMs (same semantics).
    out_small = jax.block_until_ready(
        tabular_decoder_forward(x, decoder_params, fc_params))
    assert jnp.allclose(out_small, ref, atol=1e-4, rtol=1e-4)

    # TODO(synk): Dropout(p=0.1) is identity at inference; training-mode dropout
    # would need pltpu.prng_seed/prng_random_bits inside the kernel.
    print("KERNEL_OK")
</pallas_src>

<mosaic_0001>
module attributes {stable_mosaic.version = 11 : i64} {
  func.func @_fused_mlp_kernel(%arg0: i32, %arg1: memref<2x256xf32, #tpu.memory_space<vmem>>, %arg2: memref<256x64xf32, #tpu.memory_space<vmem>>, %arg3: memref<1x64xf32, #tpu.memory_space<vmem>>, %arg4: memref<64x32xf32, #tpu.memory_space<vmem>>, %arg5: memref<1x32xf32, #tpu.memory_space<vmem>>, %arg6: memref<32x128xf32, #tpu.memory_space<vmem>>, %arg7: memref<1x128xf32, #tpu.memory_space<vmem>>, %arg8: memref<2x128xf32, #tpu.memory_space<vmem>>) attributes {dimension_semantics = [#tpu.dimension_semantics<parallel>], iteration_bounds = array<i64: 1>, scalar_prefetch = 0 : i64, scratch_operands = 0 : i64, tpu.core_type = #tpu.core_type<tc>, window_params = [{transform_indices = @transform_0, window_bounds = array<i64: 2, 256>}, {pipeline_mode = #tpu.pipeline_mode<synchronous>, transform_indices = @transform_1, window_bounds = array<i64: 256, 64>}, {pipeline_mode = #tpu.pipeline_mode<synchronous>, transform_indices = @transform_2, window_bounds = array<i64: 1, 64>}, {pipeline_mode = #tpu.pipeline_mode<synchronous>, transform_indices = @transform_3, window_bounds = array<i64: 64, 32>}, {pipeline_mode = #tpu.pipeline_mode<synchronous>, transform_indices = @transform_4, window_bounds = array<i64: 1, 32>}, {pipeline_mode = #tpu.pipeline_mode<synchronous>, transform_indices = @transform_5, window_bounds = array<i64: 32, 128>}, {pipeline_mode = #tpu.pipeline_mode<synchronous>, transform_indices = @transform_6, window_bounds = array<i64: 1, 128>}, {transform_indices = @transform_7, window_bounds = array<i64: 2, 128>}]} {
    %c0 = arith.constant 0 : index
    %c0_0 = arith.constant 0 : index
    %0 = vector.load %arg1[%c0, %c0_0] : memref<2x256xf32, #tpu.memory_space<vmem>>, vector<2x256xf32>
    %c0_1 = arith.constant 0 : index
    %c0_2 = arith.constant 0 : index
    %1 = vector.load %arg2[%c0_1, %c0_2] : memref<256x64xf32, #tpu.memory_space<vmem>>, vector<256x64xf32>
    %c0_3 = arith.constant 0 : index
    %c0_4 = arith.constant 0 : index
    %2 = vector.load %arg3[%c0_3, %c0_4] : memref<1x64xf32, #tpu.memory_space<vmem>>, vector<1x64xf32>
    %cst = arith.constant dense<0.000000e+00> : vector<2x64xf32>
    %3 = tpu.matmul %0, %1, %cst {dimension_numbers = #tpu.dot_dimension_numbers<[1], [0], [0], [1], [0, 0, 1, 1], [], []>} : vector<2x256xf32>, vector<256x64xf32>, vector<2x64xf32> -> vector<2x64xf32>
    %4 = vector.broadcast %2 : vector<1x64xf32> to vector<2x64xf32>
    %5 = arith.addf %3, %4 : vector<2x64xf32>
    %cst_5 = arith.constant 0.000000e+00 : f32
    %6 = vector.broadcast %cst_5 : f32 to vector<2x64xf32>
    %7 = arith.maximumf %5, %6 : vector<2x64xf32>
    %c0_6 = arith.constant 0 : index
    %c0_7 = arith.constant 0 : index
    %8 = vector.load %arg4[%c0_6, %c0_7] : memref<64x32xf32, #tpu.memory_space<vmem>>, vector<64x32xf32>
    %c0_8 = arith.constant 0 : index
    %c0_9 = arith.constant 0 : index
    %9 = vector.load %arg5[%c0_8, %c0_9] : memref<1x32xf32, #tpu.memory_space<vmem>>, vector<1x32xf32>
    %cst_10 = arith.constant dense<0.000000e+00> : vector<2x32xf32>
    %10 = tpu.matmul %7, %8, %cst_10 {dimension_numbers = #tpu.dot_dimension_numbers<[1], [0], [0], [1], [0, 0, 1, 1], [], []>} : vector<2x64xf32>, vector<64x32xf32>, vector<2x32xf32> -> vector<2x32xf32>
    %11 = vector.broadcast %9 : vector<1x32xf32> to vector<2x32xf32>
    %12 = arith.addf %10, %11 : vector<2x32xf32>
    %cst_11 = arith.constant 0.000000e+00 : f32
    %13 = vector.broadcast %cst_11 : f32 to vector<2x32xf32>
    %14 = arith.maximumf %12, %13 : vector<2x32xf32>
    %c0_12 = arith.constant 0 : index
    %c0_13 = arith.constant 0 : index
    %15 = vector.load %arg6[%c0_12, %c0_13] : memref<32x128xf32, #tpu.memory_space<vmem>>, vector<32x128xf32>
    %c0_14 = arith.constant 0 : index
    %c0_15 = arith.constant 0 : index
    %16 = vector.load %arg7[%c0_14, %c0_15] : memref<1x128xf32, #tpu.memory_space<vmem>>, vector<1x128xf32>
    %cst_16 = arith.constant dense<0.000000e+00> : vector<2x128xf32>
    %17 = tpu.matmul %14, %15, %cst_16 {dimension_numbers = #tpu.dot_dimension_numbers<[1], [0], [0], [1], [0, 0, 1, 1], [], []>} : vector<2x32xf32>, vector<32x128xf32>, vector<2x128xf32> -> vector<2x128xf32>
    %18 = vector.broadcast %16 : vector<1x128xf32> to vector<2x128xf32>
    %19 = arith.addf %17, %18 : vector<2x128xf32>
    %c0_17 = arith.constant 0 : index
    %c0_18 = arith.constant 0 : index
    %20 = vector.load %arg8[%c0_17, %c0_18] : memref<2x128xf32, #tpu.memory_space<vmem>>, vector<2x128xf32>
    tpu.vector_store %arg8[%c0_17, %c0_18], %19 {strides = array<i32>} : memref<2x128xf32, #tpu.memory_space<vmem>>, vector<2x128xf32>,
    return
  }
  func.func @transform_0(%arg0: i32) -> (i32, i32) {
    %c0_i32 = arith.constant 0 : i32
    %c0_i32_0 = arith.constant 0 : i32
    return %arg0, %c0_i32 : i32, i32
  }
  func.func @transform_1(%arg0: i32) -> (i32, i32) {
    %c0_i32 = arith.constant 0 : i32
    %c0_i32_0 = arith.constant 0 : i32
    %c0_i32_1 = arith.constant 0 : i32
    return %c0_i32, %c0_i32_0 : i32, i32
  }
  func.func @transform_2(%arg0: i32) -> (i32, i32) {
    %c0_i32 = arith.constant 0 : i32
    %c0_i32_0 = arith.constant 0 : i32
    %c0_i32_1 = arith.constant 0 : i32
    return %c0_i32, %c0_i32_0 : i32, i32
  }
  func.func @transform_3(%arg0: i32) -> (i32, i32) {
    %c0_i32 = arith.constant 0 : i32
    %c0_i32_0 = arith.constant 0 : i32
    %c0_i32_1 = arith.constant 0 : i32
    return %c0_i32, %c0_i32_0 : i32, i32
  }
  func.func @transform_4(%arg0: i32) -> (i32, i32) {
    %c0_i32 = arith.constant 0 : i32
    %c0_i32_0 = arith.constant 0 : i32
    %c0_i32_1 = arith.constant 0 : i32
    return %c0_i32, %c0_i32_0 : i32, i32
  }
  func.func @transform_5(%arg0: i32) -> (i32, i32) {
    %c0_i32 = arith.constant 0 : i32
    %c0_i32_0 = arith.constant 0 : i32
    %c0_i32_1 = arith.constant 0 : i32
    return %c0_i32, %c0_i32_0 : i32, i32
  }
  func.func @transform_6(%arg0: i32) -> (i32, i32) {
    %c0_i32 = arith.constant 0 : i32
    %c0_i32_0 = arith.constant 0 : i32
    %c0_i32_1 = arith.constant 0 : i32
    return %c0_i32, %c0_i32_0 : i32, i32
  }
  func.func @transform_7(%arg0: i32) -> (i32, i32) {
    %c0_i32 = arith.constant 0 : i32
    %c0_i32_0 = arith.constant 0 : i32
    return %arg0, %c0_i32 : i32, i32
  }
}

module attributes {stable_mosaic.version = 11 : i64} {
  func.func @_fused_mlp_kernel(%arg0: i32, %arg1: memref<2x256xf32, #tpu.memory_space<vmem>>, %arg2: memref<256x64xf32, #tpu.memory_space<vmem>>, %arg3: memref<1x64xf32, #tpu.memory_space<vmem>>, %arg4: memref<64x32xf32, #tpu.memory_space<vmem>>, %arg5: memref<1x32xf32, #tpu.memory_space<vmem>>, %arg6: memref<32x128xf32, #tpu.memory_space<vmem>>, %arg7: memref<1x128xf32, #tpu.memory_space<vmem>>, %arg8: memref<2x128xf32, #tpu.memory_space<vmem>>) attributes {dimension_semantics = [#tpu.dimension_semantics<parallel>], iteration_bounds = array<i64: 1>, scalar_prefetch = 0 : i64, scratch_operands = 0 : i64, tpu.core_type = #tpu.core_type<tc>, window_params = [{transform_indices = @transform_0, window_bounds = array<i64: 2, 256>}, {pipeline_mode = #tpu.pipeline_mode<synchronous>, transform_indices = @transform_1, window_bounds = array<i64: 256, 64>}, {pipeline_mode = #tpu.pipeline_mode<synchronous>, transform_indices = @transform_2, window_bounds = array<i64: 1, 64>}, {pipeline_mode = #tpu.pipeline_mode<synchronous>, transform_indices = @transform_3, window_bounds = array<i64: 64, 32>}, {pipeline_mode = #tpu.pipeline_mode<synchronous>, transform_indices = @transform_4, window_bounds = array<i64: 1, 32>}, {pipeline_mode = #tpu.pipeline_mode<synchronous>, transform_indices = @transform_5, window_bounds = array<i64: 32, 128>}, {pipeline_mode = #tpu.pipeline_mode<synchronous>, transform_indices = @transform_6, window_bounds = array<i64: 1, 128>}, {transform_indices = @transform_7, window_bounds = array<i64: 2, 128>}]} {
    %c0 = arith.constant 0 : index
    %c0_0 = arith.constant 0 : index
    %0 = vector.load %arg1[%c0, %c0_0] : memref<2x256xf32, #tpu.memory_space<vmem>>, vector<2x256xf32>
    %c0_1 = arith.constant 0 : index
    %c0_2 = arith.constant 0 : index
    %1 = vector.load %arg2[%c0_1, %c0_2] : memref<256x64xf32, #tpu.memory_space<vmem>>, vector<256x64xf32>
    %c0_3 = arith.constant 0 : index
    %c0_4 = arith.constant 0 : index
    %2 = vector.load %arg3[%c0_3, %c0_4] : memref<1x64xf32, #tpu.memory_space<vmem>>, vector<1x64xf32>
    %cst = arith.constant dense<0.000000e+00> : vector<2x64xf32>
    %3 = tpu.matmul %0, %1, %cst {dimension_numbers = #tpu.dot_dimension_numbers<[1], [0], [0], [1], [0, 0, 1, 1], [], []>} : vector<2x256xf32>, vector<256x64xf32>, vector<2x64xf32> -> vector<2x64xf32>
    %4 = vector.broadcast %2 : vector<1x64xf32> to vector<2x64xf32>
    %5 = arith.addf %3, %4 : vector<2x64xf32>
    %cst_5 = arith.constant 0.000000e+00 : f32
    %6 = vector.broadcast %cst_5 : f32 to vector<2x64xf32>
    %7 = arith.maximumf %5, %6 : vector<2x64xf32>
    %c0_6 = arith.constant 0 : index
    %c0_7 = arith.constant 0 : index
    %8 = vector.load %arg4[%c0_6, %c0_7] : memref<64x32xf32, #tpu.memory_space<vmem>>, vector<64x32xf32>
    %c0_8 = arith.constant 0 : index
    %c0_9 = arith.constant 0 : index
    %9 = vector.load %arg5[%c0_8, %c0_9] : memref<1x32xf32, #tpu.memory_space<vmem>>, vector<1x32xf32>
    %cst_10 = arith.constant dense<0.000000e+00> : vector<2x32xf32>
    %10 = tpu.matmul %7, %8, %cst_10 {dimension_numbers = #tpu.dot_dimension_numbers<[1], [0], [0], [1], [0, 0, 1, 1], [], []>} : vector<2x64xf32>, vector<64x32xf32>, vector<2x32xf32> -> vector<2x32xf32>
    %11 = vector.broadcast %9 : vector<1x32xf32> to vector<2x32xf32>
    %12 = arith.addf %10, %11 : vector<2x32xf32>
    %cst_11 = arith.constant 0.000000e+00 : f32
    %13 = vector.broadcast %cst_11 : f32 to vector<2x32xf32>
    %14 = arith.maximumf %12, %13 : vector<2x32xf32>
    %c0_12 = arith.constant 0 : index
    %c0_13 = arith.constant 0 : index
    %15 = vector.load %arg6[%c0_12, %c0_13] : memref<32x128xf32, #tpu.memory_space<vmem>>, vector<32x128xf32>
    %c0_14 = arith.constant 0 : index
    %c0_15 = arith.constant 0 : index
    %16 = vector.load %arg7[%c0_14, %c0_15] : memref<1x128xf32, #tpu.memory_space<vmem>>, vector<1x128xf32>
    %cst_16 = arith.constant dense<0.000000e+00> : vector<2x128xf32>
    %17 = tpu.matmul %14, %15, %cst_16 {dimension_numbers = #tpu.dot_dimension_numbers<[1], [0], [0], [1], [0, 0, 1, 1], [], []>} : vector<2x32xf32>, vector<32x128xf32>, vector<2x128xf32> -> vector<2x128xf32>
    %18 = vector.broadcast %16 : vector<1x128xf32> to vector<2x128xf32>
    %19 = arith.addf %17, %18 : vector<2x128xf32>
    %c0_17 = arith.constant 0 : index
    %c0_18 = arith.constant 0 : index
    %20 = vector.load %arg8[%c0_17, %c0_18] : memref<2x128xf32, #tpu.memory_space<vmem>>, vector<2x128xf32>
    tpu.vector_store %arg8[%c0_17, %c0_18], %19 {strides = array<i32>} : memref<2x128xf32, #tpu.memory_space<vmem>>, vector<2x128xf32>,
    return
  }
  func.func @transform_0(%arg0: i32) -> (i32, i32) {
    %c0_i32 = arith.constant 0 : i32
    %c0_i32_0 = arith.constant 0 : i32
    return %arg0, %c0_i32 : i32, i32
  }
  func.func @transform_1(%arg0: i32) -> (i32, i32) {
    %c0_i32 = arith.constant 0 : i32
    %c0_i32_0 = arith.constant 0 : i32
    %c0_i32_1 = arith.constant 0 : i32
    return %c0_i32, %c0_i32_0 : i32, i32
  }
  func.func @transform_2(%arg0: i32) -> (i32, i32) {
    %c0_i32 = arith.constant 0 : i32
    %c0_i32_0 = arith.constant 0 : i32
    %c0_i32_1 = arith.constant 0 : i32
    return %c0_i32, %c0_i32_0 : i32, i32
  }
  func.func @transform_3(%arg0: i32) -> (i32, i32) {
    %c0_i32 = arith.constant 0 : i32
    %c0_i32_0 = arith.constant 0 : i32
    %c0_i32_1 = arith.constant 0 : i32
    return %c0_i32, %c0_i32_0 : i32, i32
  }
  func.func @transform_4(%arg0: i32) -> (i32, i32) {
    %c0_i32 = arith.constant 0 : i32
    %c0_i32_0 = arith.constant 0 : i32
    %c0_i32_1 = arith.constant 0 : i32
    return %c0_i32, %c0_i32_0 : i32, i32
  }
  func.func @transform_5(%arg0: i32) -> (i32, i32) {
    %c0_i32 = arith.constant 0 : i32
    %c0_i32_0 = arith.constant 0 : i32
    %c0_i32_1 = arith.constant 0 : i32
    return %c0_i32, %c0_i32_0 : i32, i32
  }
  func.func @transform_6(%arg0: i32) -> (i32, i32) {
    %c0_i32 = arith.constant 0 : i32
    %c0_i32_0 = arith.constant 0 : i32
    %c0_i32_1 = arith.constant 0 : i32
    return %c0_i32, %c0_i32_0 : i32, i32
  }
  func.func @transform_7(%arg0: i32) -> (i32, i32) {
    %c0_i32 = arith.constant 0 : i32
    %c0_i32_0 = arith.constant 0 : i32
    return %arg0, %c0_i32 : i32, i32
  }
}

</mosaic_0001>

<bundles_post_ra>
// kernel: tpu_custom_call.1
= control target key start
LH: loop header
LB: loop body
LE: loop exit
PB: predicated region body
PF: predicated region fallthrough
CT: control target
= control target key end

     0   :  { %s417_s0 = inlined_call_operand.vmem [shape: f32[2,256], index: 0, kind: input, shape index: {}]   ;;  %s418_s1 = inlined_call_operand.vmem [shape: f32[256,64], index: 1, kind: input, shape index: {}]   ;;  %s419_s2 = inlined_call_operand.vmem [shape: f32[1,64], index: 2, kind: input, shape index: {}]   ;;  %s420_s3 = inlined_call_operand.vmem [shape: f32[64,32], index: 3, kind: input, shape index: {}]   ;;  %s421_s4 = inlined_call_operand.vmem [shape: f32[1,32], index: 4, kind: input, shape index: {}]   ;;  %s422_s5 = inlined_call_operand.vmem [shape: f32[32,128], index: 5, kind: input, shape index: {}]   ;;  %s423_s6 = inlined_call_operand.vmem [shape: f32[1,128], index: 6, kind: input, shape index: {}]   ;;  %s424_s7 = inlined_call_operand.hbm [shape: f32[2,128], index: 7, kind: output, shape index: {}]  }
   0x1   :  { %v43_v0 = vld [vmem:[%s418_s1 + $0x78] sm:$0xff]  ;;  %v42_v1 = vld [vmem:[%s418_s1 + $0x70] sm:$0xff]  ;;  %v41_v4 = vld [vmem:[%s418_s1 + $0x68] sm:$0xff] }
   0x2   :  { %v59_v2 = vld [vmem:[%s418_s1 + $0xf8] sm:$0xff]  ;;  %70 = vmatpush.msra.mxu0 %v43_v0  ;;  %v58_v3 = vld [vmem:[%s418_s1 + $0xf0] sm:$0xff]  ;;  %v57_v5 = vld [vmem:[%s418_s1 + $0xe8] sm:$0xff] }
   0x3   :  { %90 = vmatpush.msra.mxu1 %v59_v2  ;;  %v40_v6 = vld [vmem:[%s418_s1 + $0x60] sm:$0xff]  ;;  %v39_v8 = vld [vmem:[%s418_s1 + $0x58] sm:$0xff]  ;;  %v38_v10 = vld [vmem:[%s418_s1 + $0x50] sm:$0xff] }
   0x4   :  { %71 = vmatpush.msra.mxu0 %v42_v1  ;;  %v56_v7 = vld [vmem:[%s418_s1 + $0xe0] sm:$0xff]  ;;  %v55_v9 = vld [vmem:[%s418_s1 + $0xd8] sm:$0xff]  ;;  %v54_v11 = vld [vmem:[%s418_s1 + $0xd0] sm:$0xff] }
   0x5   :  { %91 = vmatpush.msra.mxu1 %v58_v3  ;;  %v37_v12 = vld [vmem:[%s418_s1 + $0x48] sm:$0xff]  ;;  %v27_v14 = vld [vmem:[%s417_s0] sm:$0xf]  ;;  %v118_v16 = vld [vmem:[%s420_s3 + $0x38] sm:$0xff] }
   0x6   :  { %72 = vmatpush.msra.mxu0 %v41_v4  ;;  %v53_v13 = vld [vmem:[%s418_s1 + $0xc8] sm:$0xff]  ;;  %v36_v15 = vld [vmem:[%s418_s1 + $0x40] sm:$0xff]  ;;  %65 = vst [vmem:[#allocation1] ss:$4 sm:$0xff] %v27_v14  ;;  %v117_v17 = vld [vmem:[%s420_s3 + $0x30] sm:$0xff]  ;;  %135 = vmatpush.msra.mxu2 %v118_v16 }
   0x7   :  { %92 = vmatpush.msra.mxu1 %v57_v5  ;;  %v52_v18 = vld [vmem:[%s418_s1 + $0xc0] sm:$0xff]  ;;  %v116_v19 = vld [vmem:[%s420_s3 + $0x28] sm:$0xff] }
   0x8   :  { %73 = vmatpush.msra.mxu0 %v40_v6 }
   0x9   :  { %93 = vmatpush.msra.mxu1 %v56_v7 }
   0xa   :  { %74 = vmatpush.msra.mxu0 %v39_v8 }
   0xb   :  { %94 = vmatpush.msra.mxu1 %v55_v9 }
   0xc   :  { %75 = vmatpush.msra.mxu0 %v38_v10 }
   0xd   :  { %95 = vmatpush.msra.mxu1 %v54_v11 }
   0xe   :  { %76 = vmatpush.msra.mxu0 %v37_v12 }
   0xf   :  { %96 = vmatpush.msra.mxu1 %v53_v13 }
  0x10   :  { %12 = vsyncpa [#allocation3], 0  ;;  %v35_v20 = vld [vmem:[%s418_s1 + $0x38] sm:$0xff]  ;;  %136 = vmatpush.msra.mxu2 %v117_v17  ;;  %77 = vmatpush.msra.mxu0 %v36_v15  ;;  %v115_v22 = vld [vmem:[%s420_s3 + $0x20] sm:$0xff]  ;;  %vm123_vm0 = vcmask 523264   ;;  %vm156_vm1 = vcmask 261120  }
  0x11   :  { %v51_v21 = vld [vmem:[%s418_s1 + $0xb8] sm:$0xff]  ;;  %97 = vmatpush.msra.mxu1 %v52_v18  ;;  %v34_v23 = vld [vmem:[%s418_s1 + $0x30] sm:$0xff]  ;;  %v33_v25 = vld [vmem:[%s418_s1 + $0x28] sm:$0xff]  ;;  %s229_s22 = smov [#allocation2]  }
  0x12   :  { %v50_v24 = vld [vmem:[%s418_s1 + $0xb0] sm:$0xff]  ;;  %137 = vmatpush.msra.mxu2 %v116_v19  ;;  %78 = vmatpush.msra.mxu0 %v35_v20  ;;  %v49_v26 = vld [vmem:[%s418_s1 + $0xa8] sm:$0xff]  ;;  %v32_v27 = vld [vmem:[%s418_s1 + $0x20] sm:$0xff]  ;;  %s186_s23 = sshll.u32 %s229_s22, 4  ;;  %s187_s23 = int_to_ptr.vmem [resolvable:$true] %s186_s23 }
  0x13   :  { %98 = vmatpush.msra.mxu1 %v51_v21  ;;  %v48_v28 = vld [vmem:[%s418_s1 + $0xa0] sm:$0xff]  ;;  %v31_v29 = vld [vmem:[%s418_s1 + $0x18] sm:$0xff]  ;;  %v30_v31 = vld [vmem:[%s418_s1 + $0x10] sm:$0xff] }
  0x14   :  { %138 = vmatpush.msra.mxu2 %v115_v22  ;;  %79 = vmatpush.msra.mxu0 %v34_v23  ;;  %v47_v30 = vld [vmem:[%s418_s1 + $0x98] sm:$0xff]  ;;  %v46_v32 = vld [vmem:[%s418_s1 + $0x90] sm:$0xff]  ;;  %v29_v33 = vld [vmem:[%s418_s1 + $0x8] sm:$0xff] }
  0x15   :  { %99 = vmatpush.msra.mxu1 %v50_v24  ;;  %v45_v34 = vld [vmem:[%s418_s1 + $0x88] sm:$0xff]  ;;  %v28_v35 = vld [vmem:[%s418_s1] sm:$0xff]  ;;  %v114_v39 = vld [vmem:[%s420_s3 + $0x18] sm:$0xff] }
  0x16   :  { %80 = vmatpush.msra.mxu0 %v33_v25  ;;  %v44_v36 = vld [vmem:[%s418_s1 + $0x80] sm:$0xff]  ;;  %v67_v38 = vld.sshfl [vmem:[#allocation1 + $0x8] sm:$0xff pattern:$0x73625140]  ;;  %139 = vmatpush.msra.mxu2 %v114_v39  ;;  %v113_v40 = vld [vmem:[%s420_s3 + $0x10] sm:$0xff] }
  0x17   :  { %100 = vmatpush.msra.mxu1 %v49_v26  ;;  %v66_v37 = vld.sshfl [vmem:[#allocation1] sm:$0xff pattern:$0x73625140]  ;;  %v112_v41 = vld [vmem:[%s420_s3 + $0x8] sm:$0xff]  ;;  %v151_v43 = vld [vmem:[%s422_s5 + $0x18] sm:$0xff] }
  0x18   :  { %81 = vmatpush.msra.mxu0 %v32_v27  ;;  %140 = vmatpush.msra.mxu2 %v113_v40  ;;  %v111_v42 = vld [vmem:[%s420_s3] sm:$0xff]  ;;  %v150_v50 = vld [vmem:[%s422_s5 + $0x10] sm:$0xff]  ;;  %v149_v51 = vld [vmem:[%s422_s5 + $0x8] sm:$0xff] }
  0x19   :  { %101 = vmatpush.msra.mxu1 %v48_v28  ;;  %172 = vmatpush.msra.mxu3 %v151_v43  ;;  %v200_v44 = vld [vmem:[%s419_s2] ss:$0 sm:$0xff] }
  0x1a   :  { %82 = vmatpush.msra.mxu0 %v31_v29  ;;  %141 = vmatpush.msra.mxu2 %v112_v41  ;;  %v148_v52 = vld [vmem:[%s422_s5] sm:$0xff]  ;;  %s188_s5 = sshll.u32 %s424_s7, 4  ;;  %s189_s5 = int_to_ptr.hbm [resolvable:$true] %s188_s5 }
  0x1b   :  { %102 = vmatpush.msra.mxu1 %v47_v30  ;;  %173 = vmatpush.msra.mxu3 %v150_v50  ;;  %v201_v53 = vld [vmem:[%s421_s4] ss:$0 sm:$0xff] }
  0x1c   :  { %83 = vmatpush.msra.mxu0 %v30_v31  ;;  %142 = vmatpush.msra.mxu2 %v111_v42  ;;  %v202_v57 = vld [vmem:[%s423_s6] ss:$0 sm:$0xff] }
  0x1d   :  { %103 = vmatpush.msra.mxu1 %v46_v32  ;;  %174 = vmatpush.msra.mxu3 %v149_v51 }
  0x1e   :  { %84 = vmatpush.msra.mxu0 %v29_v33 }
  0x1f   :  { %104 = vmatpush.msra.mxu1 %v45_v34  ;;  %175 = vmatpush.msra.mxu3 %v148_v52 }
  0x20   :  { %85 = vmatpush.msra.mxu0 %v28_v35 }
  0x21   :  { %105 = vmatpush.msra.mxu1 %v44_v36  ;;  %86 = vmatmul.f32.vlgmr.msra.gmra.mxu0 %v66_v37 }
  0x22   :  { %106 = vmatmul.f32.vlgmr.msra.gmra.mxu1 %v67_v38 }
  0x9e   :  { %v87_v45 = vpop.f32.mrf.mxu0 }
  0x9f   :  { %v107_v46 = vpop.f32.mrf.mxu1  ;;  %v88_v47 = vadd.f32 %v200_v44, %v87_v45 }
  0xa1   :  { %v108_v48 = vadd.f32 %v107_v46, %v88_v47 }
  0xa3   :  { %v110_v49 = vmax.f32 %v108_v48, 0.0 }
  0xa5   :  { %197 = vmatmul.msk.f32.vlgmr.msra.gmra.mxu2 %vm123_vm0, %v110_v49 }
 0x128   :  { %v144_v54 = vpop.f32.mrf.mxu2 }
 0x129   :  { %v145_v55 = vadd.f32 %v201_v53, %v144_v54 }
 0x12b   :  { %v147_v56 = vmax.f32 %v145_v55, 0.0 }
 0x12d   :  { %198 = vmatmul.msk.f32.vlgmr.msra.gmra.mxu3 %vm156_vm1, %v147_v56 }
 0x1b0   :  { %v177_v58 = vpop.f32.mrf.mxu3 }
 0x1b1   :  { %v178_v59 = vadd.f32 %v202_v57, %v177_v58 }
 0x1b3   :  { %180 = vst [vmem:[#allocation2] sm:$0x3] %v178_v59 }
 0x1b4   :  { %191 = dma.vmem_to_hbm [thread:$0]  %s187_s23, 32, %s189_s5, [#allocation3]  }
 0x1b5   :  { %227 = dma.done.wait [#allocation3], 32  }
 0x1b6   :  { %228 = vsyncadd [#allocation3], 4294967264 }
 0x1b7   :  { %196 = vsyncpa [#allocation3], 1 }

// kernel: tpu_custom_call.1
= control target key start
LH: loop header
LB: loop body
LE: loop exit
PB: predicated region body
PF: predicated region fallthrough
CT: control target
= control target key end

     0   :  { %s417_s0 = inlined_call_operand.vmem [shape: f32[2,256], index: 0, kind: input, shape index: {}]   ;;  %s418_s1 = inlined_call_operand.vmem [shape: f32[256,64], index: 1, kind: input, shape index: {}]   ;;  %s419_s2 = inlined_call_operand.vmem [shape: f32[1,64], index: 2, kind: input, shape index: {}]   ;;  %s420_s3 = inlined_call_operand.vmem [shape: f32[64,32], index: 3, kind: input, shape index: {}]   ;;  %s421_s4 = inlined_call_operand.vmem [shape: f32[1,32], index: 4, kind: input, shape index: {}]   ;;  %s422_s5 = inlined_call_operand.vmem [shape: f32[32,128], index: 5, kind: input, shape index: {}]   ;;  %s423_s6 = inlined_call_operand.vmem [shape: f32[1,128], index: 6, kind: input, shape index: {}]   ;;  %s424_s7 = inlined_call_operand.hbm [shape: f32[2,128], index: 7, kind: output, shape index: {}]  }
   0x1   :  { %v43_v0 = vld [vmem:[%s418_s1 + $0x78] sm:$0xff]  ;;  %v42_v1 = vld [vmem:[%s418_s1 + $0x70] sm:$0xff]  ;;  %v41_v4 = vld [vmem:[%s418_s1 + $0x68] sm:$0xff] }
   0x2   :  { %v59_v2 = vld [vmem:[%s418_s1 + $0xf8] sm:$0xff]  ;;  %70 = vmatpush.msra.mxu0 %v43_v0  ;;  %v58_v3 = vld [vmem:[%s418_s1 + $0xf0] sm:$0xff]  ;;  %v57_v5 = vld [vmem:[%s418_s1 + $0xe8] sm:$0xff] }
   0x3   :  { %90 = vmatpush.msra.mxu1 %v59_v2  ;;  %v40_v6 = vld [vmem:[%s418_s1 + $0x60] sm:$0xff]  ;;  %v39_v8 = vld [vmem:[%s418_s1 + $0x58] sm:$0xff]  ;;  %v38_v10 = vld [vmem:[%s418_s1 + $0x50] sm:$0xff] }
   0x4   :  { %71 = vmatpush.msra.mxu0 %v42_v1  ;;  %v56_v7 = vld [vmem:[%s418_s1 + $0xe0] sm:$0xff]  ;;  %v55_v9 = vld [vmem:[%s418_s1 + $0xd8] sm:$0xff]  ;;  %v54_v11 = vld [vmem:[%s418_s1 + $0xd0] sm:$0xff] }
   0x5   :  { %91 = vmatpush.msra.mxu1 %v58_v3  ;;  %v37_v12 = vld [vmem:[%s418_s1 + $0x48] sm:$0xff]  ;;  %v27_v14 = vld [vmem:[%s417_s0] sm:$0xf]  ;;  %v118_v16 = vld [vmem:[%s420_s3 + $0x38] sm:$0xff] }
   0x6   :  { %72 = vmatpush.msra.mxu0 %v41_v4  ;;  %v53_v13 = vld [vmem:[%s418_s1 + $0xc8] sm:$0xff]  ;;  %v36_v15 = vld [vmem:[%s418_s1 + $0x40] sm:$0xff]  ;;  %65 = vst [vmem:[#allocation1] ss:$4 sm:$0xff] %v27_v14  ;;  %v117_v17 = vld [vmem:[%s420_s3 + $0x30] sm:$0xff]  ;;  %135 = vmatpush.msra.mxu2 %v118_v16 }
   0x7   :  { %92 = vmatpush.msra.mxu1 %v57_v5  ;;  %v52_v18 = vld [vmem:[%s418_s1 + $0xc0] sm:$0xff]  ;;  %v116_v19 = vld [vmem:[%s420_s3 + $0x28] sm:$0xff] }
   0x8   :  { %73 = vmatpush.msra.mxu0 %v40_v6 }
   0x9   :  { %93 = vmatpush.msra.mxu1 %v56_v7 }
   0xa   :  { %74 = vmatpush.msra.mxu0 %v39_v8 }
   0xb   :  { %94 = vmatpush.msra.mxu1 %v55_v9 }
   0xc   :  { %75 = vmatpush.msra.mxu0 %v38_v10 }
   0xd   :  { %95 = vmatpush.msra.mxu1 %v54_v11 }
   0xe   :  { %76 = vmatpush.msra.mxu0 %v37_v12 }
   0xf   :  { %96 = vmatpush.msra.mxu1 %v53_v13 }
  0x10   :  { %12 = vsyncpa [#allocation3], 0  ;;  %v35_v20 = vld [vmem:[%s418_s1 + $0x38] sm:$0xff]  ;;  %136 = vmatpush.msra.mxu2 %v117_v17  ;;  %77 = vmatpush.msra.mxu0 %v36_v15  ;;  %v115_v22 = vld [vmem:[%s420_s3 + $0x20] sm:$0xff]  ;;  %vm123_vm0 = vcmask 523264   ;;  %vm156_vm1 = vcmask 261120  }
  0x11   :  { %v51_v21 = vld [vmem:[%s418_s1 + $0xb8] sm:$0xff]  ;;  %97 = vmatpush.msra.mxu1 %v52_v18  ;;  %v34_v23 = vld [vmem:[%s418_s1 + $0x30] sm:$0xff]  ;;  %v33_v25 = vld [vmem:[%s418_s1 + $0x28] sm:$0xff]  ;;  %s229_s22 = smov [#allocation2]  }
  0x12   :  { %v50_v24 = vld [vmem:[%s418_s1 + $0xb0] sm:$0xff]  ;;  %137 = vmatpush.msra.mxu2 %v116_v19  ;;  %78 = vmatpush.msra.mxu0 %v35_v20  ;;  %v49_v26 = vld [vmem:[%s418_s1 + $0xa8] sm:$0xff]  ;;  %v32_v27 = vld [vmem:[%s418_s1 + $0x20] sm:$0xff]  ;;  %s186_s23 = sshll.u32 %s229_s22, 4  ;;  %s187_s23 = int_to_ptr.vmem [resolvable:$true] %s186_s23 }
  0x13   :  { %98 = vmatpush.msra.mxu1 %v51_v21  ;;  %v48_v28 = vld [vmem:[%s418_s1 + $0xa0] sm:$0xff]  ;;  %v31_v29 = vld [vmem:[%s418_s1 + $0x18] sm:$0xff]  ;;  %v30_v31 = vld [vmem:[%s418_s1 + $0x10] sm:$0xff] }
  0x14   :  { %138 = vmatpush.msra.mxu2 %v115_v22  ;;  %79 = vmatpush.msra.mxu0 %v34_v23  ;;  %v47_v30 = vld [vmem:[%s418_s1 + $0x98] sm:$0xff]  ;;  %v46_v32 = vld [vmem:[%s418_s1 + $0x90] sm:$0xff]  ;;  %v29_v33 = vld [vmem:[%s418_s1 + $0x8] sm:$0xff] }
  0x15   :  { %99 = vmatpush.msra.mxu1 %v50_v24  ;;  %v45_v34 = vld [vmem:[%s418_s1 + $0x88] sm:$0xff]  ;;  %v28_v35 = vld [vmem:[%s418_s1] sm:$0xff]  ;;  %v114_v39 = vld [vmem:[%s420_s3 + $0x18] sm:$0xff] }
  0x16   :  { %80 = vmatpush.msra.mxu0 %v33_v25  ;;  %v44_v36 = vld [vmem:[%s418_s1 + $0x80] sm:$0xff]  ;;  %v67_v38 = vld.sshfl [vmem:[#allocation1 + $0x8] sm:$0xff pattern:$0x73625140]  ;;  %139 = vmatpush.msra.mxu2 %v114_v39  ;;  %v113_v40 = vld [vmem:[%s420_s3 + $0x10] sm:$0xff] }
  0x17   :  { %100 = vmatpush.msra.mxu1 %v49_v26  ;;  %v66_v37 = vld.sshfl [vmem:[#allocation1] sm:$0xff pattern:$0x73625140]  ;;  %v112_v41 = vld [vmem:[%s420_s3 + $0x8] sm:$0xff]  ;;  %v151_v43 = vld [vmem:[%s422_s5 + $0x18] sm:$0xff] }
  0x18   :  { %81 = vmatpush.msra.mxu0 %v32_v27  ;;  %140 = vmatpush.msra.mxu2 %v113_v40  ;;  %v111_v42 = vld [vmem:[%s420_s3] sm:$0xff]  ;;  %v150_v50 = vld [vmem:[%s422_s5 + $0x10] sm:$0xff]  ;;  %v149_v51 = vld [vmem:[%s422_s5 + $0x8] sm:$0xff] }
  0x19   :  { %101 = vmatpush.msra.mxu1 %v48_v28  ;;  %172 = vmatpush.msra.mxu3 %v151_v43  ;;  %v200_v44 = vld [vmem:[%s419_s2] ss:$0 sm:$0xff] }
  0x1a   :  { %82 = vmatpush.msra.mxu0 %v31_v29  ;;  %141 = vmatpush.msra.mxu2 %v112_v41  ;;  %v148_v52 = vld [vmem:[%s422_s5] sm:$0xff]  ;;  %s188_s5 = sshll.u32 %s424_s7, 4  ;;  %s189_s5 = int_to_ptr.hbm [resolvable:$true] %s188_s5 }
  0x1b   :  { %102 = vmatpush.msra.mxu1 %v47_v30  ;;  %173 = vmatpush.msra.mxu3 %v150_v50  ;;  %v201_v53 = vld [vmem:[%s421_s4] ss:$0 sm:$0xff] }
  0x1c   :  { %83 = vmatpush.msra.mxu0 %v30_v31  ;;  %142 = vmatpush.msra.mxu2 %v111_v42  ;;  %v202_v57 = vld [vmem:[%s423_s6] ss:$0 sm:$0xff] }
  0x1d   :  { %103 = vmatpush.msra.mxu1 %v46_v32  ;;  %174 = vmatpush.msra.mxu3 %v149_v51 }
  0x1e   :  { %84 = vmatpush.msra.mxu0 %v29_v33 }
  0x1f   :  { %104 = vmatpush.msra.mxu1 %v45_v34  ;;  %175 = vmatpush.msra.mxu3 %v148_v52 }
  0x20   :  { %85 = vmatpush.msra.mxu0 %v28_v35 }
  0x21   :  { %105 = vmatpush.msra.mxu1 %v44_v36  ;;  %86 = vmatmul.f32.vlgmr.msra.gmra.mxu0 %v66_v37 }
  0x22   :  { %106 = vmatmul.f32.vlgmr.msra.gmra.mxu1 %v67_v38 }
  0x9e   :  { %v87_v45 = vpop.f32.mrf.mxu0 }
  0x9f   :  { %v107_v46 = vpop.f32.mrf.mxu1  ;;  %v88_v47 = vadd.f32 %v200_v44, %v87_v45 }
  0xa1   :  { %v108_v48 = vadd.f32 %v107_v46, %v88_v47 }
  0xa3   :  { %v110_v49 = vmax.f32 %v108_v48, 0.0 }
  0xa5   :  { %197 = vmatmul.msk.f32.vlgmr.msra.gmra.mxu2 %vm123_vm0, %v110_v49 }
 0x128   :  { %v144_v54 = vpop.f32.mrf.mxu2 }
 0x129   :  { %v145_v55 = vadd.f32 %v201_v53, %v144_v54 }
 0x12b   :  { %v147_v56 = vmax.f32 %v145_v55, 0.0 }
 0x12d   :  { %198 = vmatmul.msk.f32.vlgmr.msra.gmra.mxu3 %vm156_vm1, %v147_v56 }
 0x1b0   :  { %v177_v58 = vpop.f32.mrf.mxu3 }
 0x1b1   :  { %v178_v59 = vadd.f32 %v202_v57, %v177_v58 }
 0x1b3   :  { %180 = vst [vmem:[#allocation2] sm:$0x3] %v178_v59 }
 0x1b4   :  { %191 = dma.vmem_to_hbm [thread:$0]  %s187_s23, 32, %s189_s5, [#allocation3]  }
 0x1b5   :  { %227 = dma.done.wait [#allocation3], 32  }
 0x1b6   :  { %228 = vsyncadd [#allocation3], 4294967264 }
 0x1b7   :  { %196 = vsyncpa [#allocation3], 1 }

</bundles_post_ra>
